<compile_context>
chip_gen: v5e
topology: v5e:2x2
jax: 0.10.0
libtpu: 0.0.40
codegen_flags: <defaults>
</compile_context>

<pallas_src>
import math

import jax
import jax.numpy as jnp
from jax.experimental import pallas as pl
from jax.experimental.pallas import tpu as pltpu

HIDDEN = 128
NUM_STREAMS = 3


def _encoder_kernel(cont_ref, categ_ref, cli_ref,
                    wc_ref, wg_ref, wl_ref,
                    bc_ref, bg_ref, bl_ref,
                    out_ref):
    # Three tiny MXU pushes (K <= a few dozen each), fp32 accumulation, bias
    # added in fp32 after accumulation.  Each result is a full lane-dense
    # (blk, 128) slab stored into one stream slot of the (3, blk, 128) output.
    acc_c = jnp.dot(cont_ref[...], wc_ref[...], preferred_element_type=jnp.float32)
    out_ref[0] = (acc_c + bc_ref[...].astype(jnp.float32)).astype(out_ref.dtype)

    acc_g = jnp.dot(categ_ref[...], wg_ref[...], preferred_element_type=jnp.float32)
    out_ref[1] = (acc_g + bg_ref[...].astype(jnp.float32)).astype(out_ref.dtype)

    acc_l = jnp.dot(cli_ref[...], wl_ref[...], preferred_element_type=jnp.float32)
    out_ref[2] = (acc_l + bl_ref[...].astype(jnp.float32)).astype(out_ref.dtype)


def _round_up(x, m):
    return (x + m - 1) // m * m


def input_encoder(cont, categ, cli, params, *, compute_dtype=None, block_b=1024):
    """Fused forward of InputEncoder.

    Returns (3, B, 128), matching
    torch.stack([contInput(cont), categInput(categ), cliInput(cli)]).
    compute_dtype=jnp.bfloat16 enables the reduced-precision MXU path
    (fp32 accumulation, fp32 bias add, fp32 output).
    """
    wc, bc = params["cont"]
    wg, bg = params["categ"]
    wl, bl = params["cli"]

    cont_len, categ_len, cli_len = wc.shape[0], wg.shape[0], wl.shape[0]
    B = cont.shape[0]
    out_dtype = cont.dtype

    # Biases kept fp32, shaped (1, 128) for a clean lane-dense broadcast.
    bc2 = bc.reshape(1, HIDDEN).astype(jnp.float32)
    bg2 = bg.reshape(1, HIDDEN).astype(jnp.float32)
    bl2 = bl.reshape(1, HIDDEN).astype(jnp.float32)

    # Optional reduced-precision activations/weights (bias add stays fp32).
    if compute_dtype is not None:
        cont, categ, cli = (x.astype(compute_dtype) for x in (cont, categ, cli))
        wc, wg, wl = (w.astype(compute_dtype) for w in (wc, wg, wl))

    # Batch tile: multiple of 8, capped so the grid has >= 2 steps when B > 8
    # (keeps both v7x TensorCores busy); ragged last block is masked by Pallas.
    blk = min(block_b, max(8, _round_up(pl.cdiv(B, 2), 8)))
    grid = (pl.cdiv(B, blk),)

    itemsize = lambda a: jnp.dtype(a.dtype).itemsize
    bytes_accessed = (
        sum(a.size * itemsize(a) for a in (cont, categ, cli, wc, wg, wl))
        + NUM_STREAMS * HIDDEN * 4
        + NUM_STREAMS * B * HIDDEN * jnp.dtype(out_dtype).itemsize)
    cost = pl.CostEstimate(
        flops=2 * B * (cont_len + categ_len + cli_len) * HIDDEN,
        transcendentals=0,
        bytes_accessed=bytes_accessed)

    out = pl.pallas_call(
        _encoder_kernel,
        out_shape=jax.ShapeDtypeStruct((NUM_STREAMS, B, HIDDEN), out_dtype),
        grid_spec=pltpu.PrefetchScalarGridSpec(
            num_scalar_prefetch=0,
            grid=grid,
            in_specs=[
                # Activation tiles march along the batch axis.
                pl.BlockSpec((blk, cont_len), lambda i: (i, 0)),
                pl.BlockSpec((blk, categ_len), lambda i: (i, 0)),
                pl.BlockSpec((blk, cli_len), lambda i: (i, 0)),
                # Weights / biases stay VMEM-resident across grid steps.
                pl.BlockSpec((cont_len, HIDDEN), lambda i: (0, 0)),
                pl.BlockSpec((categ_len, HIDDEN), lambda i: (0, 0)),
                pl.BlockSpec((cli_len, HIDDEN), lambda i: (0, 0)),
                pl.BlockSpec((1, HIDDEN), lambda i: (0, 0)),
                pl.BlockSpec((1, HIDDEN), lambda i: (0, 0)),
                pl.BlockSpec((1, HIDDEN), lambda i: (0, 0)),
            ],
            # Output emitted directly in (3, B, 128) layout.
            out_specs=pl.BlockSpec((NUM_STREAMS, blk, HIDDEN),
                                   lambda i: (0, i, 0)),
        ),
        compiler_params=pltpu.CompilerParams(
            dimension_semantics=("parallel",)),
        cost_estimate=cost,
    )(cont, categ, cli, wc, wg, wl, bc2, bg2, bl2)

    return out


def init_linear_params(key, in_features, out_features, dtype=jnp.float32):
    """Deterministic init matching torch.nn.Linear default (uniform +-1/sqrt(fan_in)).
    Weight returned already transposed to (in_features, out_features)."""
    kw, kb = jax.random.split(key)
    bound = 1.0 / math.sqrt(in_features)
    w = jax.random.uniform(kw, (in_features, out_features), dtype,
                           minval=-bound, maxval=bound)
    b = jax.random.uniform(kb, (out_features,), dtype,
                           minval=-bound, maxval=bound)
    return w, b


if __name__ == "__main__":
    key = jax.random.PRNGKey(0)
    k_cont, k_categ, k_cli, kx1, kx2, kx3 = jax.random.split(key, 6)

    # Small shapes consistent with the module's forward; B deliberately not a
    # multiple of 8 to exercise the ragged (masked) boundary block.
    B, contLen, categLen, cliLen = 10, 16, 12, 20

    params = {
        "cont": init_linear_params(k_cont, contLen, HIDDEN),
        "categ": init_linear_params(k_categ, categLen, HIDDEN),
        "cli": init_linear_params(k_cli, cliLen, HIDDEN),
    }

    cont = jax.random.normal(kx1, (B, contLen), jnp.float32)
    categ = jax.random.normal(kx2, (B, categLen), jnp.float32)
    cli = jax.random.normal(kx3, (B, cliLen), jnp.float32)

    # Pure-JAX reference (same semantics as the PyTorch module).
    ref = jnp.stack([
        cont @ params["cont"][0] + params["cont"][1],
        categ @ params["categ"][0] + params["categ"][1],
        cli @ params["cli"][0] + params["cli"][1],
    ])

    # fp32 path (default): strict check against the reference.
    out = input_encoder(cont, categ, cli, params)
    jax.block_until_ready(out)
    assert out.shape == (NUM_STREAMS, B, HIDDEN)
    assert jnp.allclose(out, ref, atol=1e-5, rtol=1e-5)

    # bf16 compute fast path (v5e/v6e/v7x): looser check, fp32 accumulation.
    out_bf16 = input_encoder(cont, categ, cli, params,
                             compute_dtype=jnp.bfloat16)
    jax.block_until_ready(out_bf16)
    assert out_bf16.shape == (NUM_STREAMS, B, HIDDEN)
    assert jnp.allclose(out_bf16, ref, atol=5e-2, rtol=5e-2)

    print("KERNEL_OK")
</pallas_src>

<mosaic_0001>
module attributes {stable_mosaic.version = 11 : i64} {
  func.func @_encoder_kernel(%arg0: i32, %arg1: memref<8x16xf32, #tpu.memory_space<vmem>>, %arg2: memref<8x12xf32, #tpu.memory_space<vmem>>, %arg3: memref<8x20xf32, #tpu.memory_space<vmem>>, %arg4: memref<16x128xf32, #tpu.memory_space<vmem>>, %arg5: memref<12x128xf32, #tpu.memory_space<vmem>>, %arg6: memref<20x128xf32, #tpu.memory_space<vmem>>, %arg7: memref<1x128xf32, #tpu.memory_space<vmem>>, %arg8: memref<1x128xf32, #tpu.memory_space<vmem>>, %arg9: memref<1x128xf32, #tpu.memory_space<vmem>>, %arg10: memref<3x8x128xf32, #tpu.memory_space<vmem>>) attributes {dimension_semantics = [#tpu.dimension_semantics<parallel>], iteration_bounds = array<i64: 2>, scalar_prefetch = 0 : i64, scratch_operands = 0 : i64, tpu.core_type = #tpu.core_type<tc>, window_params = [{transform_indices = @transform_0, window_bounds = array<i64: 8, 16>}, {transform_indices = @transform_1, window_bounds = array<i64: 8, 12>}, {transform_indices = @transform_2, window_bounds = array<i64: 8, 20>}, {pipeline_mode = #tpu.pipeline_mode<synchronous>, transform_indices = @transform_3, window_bounds = array<i64: 16, 128>}, {pipeline_mode = #tpu.pipeline_mode<synchronous>, transform_indices = @transform_4, window_bounds = array<i64: 12, 128>}, {pipeline_mode = #tpu.pipeline_mode<synchronous>, transform_indices = @transform_5, window_bounds = array<i64: 20, 128>}, {pipeline_mode = #tpu.pipeline_mode<synchronous>, transform_indices = @transform_6, window_bounds = array<i64: 1, 128>}, {pipeline_mode = #tpu.pipeline_mode<synchronous>, transform_indices = @transform_7, window_bounds = array<i64: 1, 128>}, {pipeline_mode = #tpu.pipeline_mode<synchronous>, transform_indices = @transform_8, window_bounds = array<i64: 1, 128>}, {transform_indices = @transform_9, window_bounds = array<i64: 3, 8, 128>}]} {
    %c0 = arith.constant 0 : index
    %c0_0 = arith.constant 0 : index
    %0 = vector.load %arg1[%c0, %c0_0] : memref<8x16xf32, #tpu.memory_space<vmem>>, vector<8x16xf32>
    %c0_1 = arith.constant 0 : index
    %c0_2 = arith.constant 0 : index
    %1 = vector.load %arg4[%c0_1, %c0_2] : memref<16x128xf32, #tpu.memory_space<vmem>>, vector<16x128xf32>
    %cst = arith.constant dense<0.000000e+00> : vector<8x128xf32>
    %2 = tpu.matmul %0, %1, %cst {dimension_numbers = #tpu.dot_dimension_numbers<[1], [0], [0], [1], [0, 0, 1, 1], [], []>} : vector<8x16xf32>, vector<16x128xf32>, vector<8x128xf32> -> vector<8x128xf32>
    %c0_3 = arith.constant 0 : index
    %c0_4 = arith.constant 0 : index
    %3 = vector.load %arg7[%c0_3, %c0_4] : memref<1x128xf32, #tpu.memory_space<vmem>>, vector<1x128xf32>
    %4 = vector.broadcast %3 : vector<1x128xf32> to vector<8x128xf32>
    %5 = arith.addf %2, %4 : vector<8x128xf32>
    %c0_5 = arith.constant 0 : index
    %c0_6 = arith.constant 0 : index
    %c0_7 = arith.constant 0 : index
    %6 = vector.load %arg10[%c0_5, %c0_6, %c0_7] : memref<3x8x128xf32, #tpu.memory_space<vmem>>, vector<1x8x128xf32>
    %7 = vector.shape_cast %6 : vector<1x8x128xf32> to vector<8x128xf32>
    %8 = vector.shape_cast %5 : vector<8x128xf32> to vector<1x8x128xf32>
    tpu.vector_store %arg10[%c0_5, %c0_6, %c0_7], %8 {strides = array<i32>} : memref<3x8x128xf32, #tpu.memory_space<vmem>>, vector<1x8x128xf32>,
    %c0_8 = arith.constant 0 : index
    %c0_9 = arith.constant 0 : index
    %9 = vector.load %arg2[%c0_8, %c0_9] : memref<8x12xf32, #tpu.memory_space<vmem>>, vector<8x12xf32>
    %c0_10 = arith.constant 0 : index
    %c0_11 = arith.constant 0 : index
    %10 = vector.load %arg5[%c0_10, %c0_11] : memref<12x128xf32, #tpu.memory_space<vmem>>, vector<12x128xf32>
    %cst_12 = arith.constant dense<0.000000e+00> : vector<8x128xf32>
    %11 = tpu.matmul %9, %10, %cst_12 {dimension_numbers = #tpu.dot_dimension_numbers<[1], [0], [0], [1], [0, 0, 1, 1], [], []>} : vector<8x12xf32>, vector<12x128xf32>, vector<8x128xf32> -> vector<8x128xf32>
    %c0_13 = arith.constant 0 : index
    %c0_14 = arith.constant 0 : index
    %12 = vector.load %arg8[%c0_13, %c0_14] : memref<1x128xf32, #tpu.memory_space<vmem>>, vector<1x128xf32>
    %13 = vector.broadcast %12 : vector<1x128xf32> to vector<8x128xf32>
    %14 = arith.addf %11, %13 : vector<8x128xf32>
    %c1 = arith.constant 1 : index
    %c0_15 = arith.constant 0 : index
    %c0_16 = arith.constant 0 : index
    %15 = vector.load %arg10[%c1, %c0_15, %c0_16] : memref<3x8x128xf32, #tpu.memory_space<vmem>>, vector<1x8x128xf32>
    %16 = vector.shape_cast %15 : vector<1x8x128xf32> to vector<8x128xf32>
    %17 = vector.shape_cast %14 : vector<8x128xf32> to vector<1x8x128xf32>
    tpu.vector_store %arg10[%c1, %c0_15, %c0_16], %17 {strides = array<i32>} : memref<3x8x128xf32, #tpu.memory_space<vmem>>, vector<1x8x128xf32>,
    %c0_17 = arith.constant 0 : index
    %c0_18 = arith.constant 0 : index
    %18 = vector.load %arg3[%c0_17, %c0_18] : memref<8x20xf32, #tpu.memory_space<vmem>>, vector<8x20xf32>
    %c0_19 = arith.constant 0 : index
    %c0_20 = arith.constant 0 : index
    %19 = vector.load %arg6[%c0_19, %c0_20] : memref<20x128xf32, #tpu.memory_space<vmem>>, vector<20x128xf32>
    %cst_21 = arith.constant dense<0.000000e+00> : vector<8x128xf32>
    %20 = tpu.matmul %18, %19, %cst_21 {dimension_numbers = #tpu.dot_dimension_numbers<[1], [0], [0], [1], [0, 0, 1, 1], [], []>} : vector<8x20xf32>, vector<20x128xf32>, vector<8x128xf32> -> vector<8x128xf32>
    %c0_22 = arith.constant 0 : index
    %c0_23 = arith.constant 0 : index
    %21 = vector.load %arg9[%c0_22, %c0_23] : memref<1x128xf32, #tpu.memory_space<vmem>>, vector<1x128xf32>
    %22 = vector.broadcast %21 : vector<1x128xf32> to vector<8x128xf32>
    %23 = arith.addf %20, %22 : vector<8x128xf32>
    %c2 = arith.constant 2 : index
    %c0_24 = arith.constant 0 : index
    %c0_25 = arith.constant 0 : index
    %24 = vector.load %arg10[%c2, %c0_24, %c0_25] : memref<3x8x128xf32, #tpu.memory_space<vmem>>, vector<1x8x128xf32>
    %25 = vector.shape_cast %24 : vector<1x8x128xf32> to vector<8x128xf32>
    %26 = vector.shape_cast %23 : vector<8x128xf32> to vector<1x8x128xf32>
    tpu.vector_store %arg10[%c2, %c0_24, %c0_25], %26 {strides = array<i32>} : memref<3x8x128xf32, #tpu.memory_space<vmem>>, vector<1x8x128xf32>,
    return
  }
  func.func @transform_0(%arg0: i32) -> (i32, i32) {
    %c0_i32 = arith.constant 0 : i32
    %c0_i32_0 = arith.constant 0 : i32
    return %arg0, %c0_i32 : i32, i32
  }
  func.func @transform_1(%arg0: i32) -> (i32, i32) {
    %c0_i32 = arith.constant 0 : i32
    %c0_i32_0 = arith.constant 0 : i32
    return %arg0, %c0_i32 : i32, i32
  }
  func.func @transform_2(%arg0: i32) -> (i32, i32) {
    %c0_i32 = arith.constant 0 : i32
    %c0_i32_0 = arith.constant 0 : i32
    return %arg0, %c0_i32 : i32, i32
  }
  func.func @transform_3(%arg0: i32) -> (i32, i32) {
    %c0_i32 = arith.constant 0 : i32
    %c0_i32_0 = arith.constant 0 : i32
    %c0_i32_1 = arith.constant 0 : i32
    return %c0_i32, %c0_i32_0 : i32, i32
  }
  func.func @transform_4(%arg0: i32) -> (i32, i32) {
    %c0_i32 = arith.constant 0 : i32
    %c0_i32_0 = arith.constant 0 : i32
    %c0_i32_1 = arith.constant 0 : i32
    return %c0_i32, %c0_i32_0 : i32, i32
  }
  func.func @transform_5(%arg0: i32) -> (i32, i32) {
    %c0_i32 = arith.constant 0 : i32
    %c0_i32_0 = arith.constant 0 : i32
    %c0_i32_1 = arith.constant 0 : i32
    return %c0_i32, %c0_i32_0 : i32, i32
  }
  func.func @transform_6(%arg0: i32) -> (i32, i32) {
    %c0_i32 = arith.constant 0 : i32
    %c0_i32_0 = arith.constant 0 : i32
    %c0_i32_1 = arith.constant 0 : i32
    return %c0_i32, %c0_i32_0 : i32, i32
  }
  func.func @transform_7(%arg0: i32) -> (i32, i32) {
    %c0_i32 = arith.constant 0 : i32
    %c0_i32_0 = arith.constant 0 : i32
    %c0_i32_1 = arith.constant 0 : i32
    return %c0_i32, %c0_i32_0 : i32, i32
  }
  func.func @transform_8(%arg0: i32) -> (i32, i32) {
    %c0_i32 = arith.constant 0 : i32
    %c0_i32_0 = arith.constant 0 : i32
    %c0_i32_1 = arith.constant 0 : i32
    return %c0_i32, %c0_i32_0 : i32, i32
  }
  func.func @transform_9(%arg0: i32) -> (i32, i32, i32) {
    %c0_i32 = arith.constant 0 : i32
    %c0_i32_0 = arith.constant 0 : i32
    %c0_i32_1 = arith.constant 0 : i32
    return %c0_i32, %arg0, %c0_i32_0 : i32, i32, i32
  }
}

</mosaic_0001>

<bundles_post_ra>
// kernel: tpu_custom_call.1
= control target key start
LH: loop header
LB: loop body
LE: loop exit
PB: predicated region body
PF: predicated region fallthrough
CT: control target
= control target key end

     0   :  { %s1371_s0 = inlined_call_operand.hbm [shape: f32[10,16], index: 0, kind: input, shape index: {}]   ;;  %s1372_s1 = inlined_call_operand.hbm [shape: f32[10,12], index: 1, kind: input, shape index: {}]   ;;  %s1373_s2 = inlined_call_operand.hbm [shape: f32[10,20], index: 2, kind: input, shape index: {}]   ;;  %s1374_s3 = inlined_call_operand.hbm [shape: f32[16,128], index: 3, kind: input, shape index: {}]   ;;  %s1375_s4 = inlined_call_operand.hbm [shape: f32[12,128], index: 4, kind: input, shape index: {}]   ;;  %s1376_s5 = inlined_call_operand.hbm [shape: f32[20,128], index: 5, kind: input, shape index: {}]   ;;  %s1377_s6 = inlined_call_operand.vmem [shape: f32[1,128], index: 6, kind: input, shape index: {}]   ;;  %s1378_s7 = inlined_call_operand.vmem [shape: f32[1,128], index: 7, kind: input, shape index: {}]   ;;  %s1379_s8 = inlined_call_operand.vmem [shape: f32[1,128], index: 8, kind: input, shape index: {}]   ;;  %s1380_s9 = inlined_call_operand.vmem [shape: f32[3,10,128], index: 9, kind: output, shape index: {}]  }
   0x1   :  { %1388 = sst [smem:[#allocation19_spill]] %s1372_s1 }
   0x2   :  { %1389 = sst [smem:[#allocation20_spill]] %s1374_s3 }
   0x3   :  { %1390 = sst [smem:[#allocation21_spill]] %s1375_s4 }
   0x4   :  { %1391 = sst [smem:[#allocation22_spill]] %s1376_s5 }
   0x5   :  { %14 = vsyncpa [#allocation3], 0 }
   0x6   :  { %16 = vsyncpa [#allocation3 + $0x1], 0 }
   0x7   :  { %17 = vsyncpa [#allocation5], 0 }
   0x8   :  { %19 = vsyncpa [#allocation5 + $0x1], 0 }
   0x9   :  { %20 = vsyncpa [#allocation8], 0 }
   0xa   :  { %21 = vsyncpa [#allocation11], 0  ;;  %s1159_s30 = smov 0   ;;  %s1161_s10 = smov 0  }
   0xb   :  { %s1163_s11 = smov 0   ;;  %s1165_s12 = smov 0  }
   0xc LB: > { %s1392_s3 = sld [smem:[#allocation20_spill]]  ;;  %s1181_s16 = sadd.s32 4294967295, %s1102_s12   ;;  %s1102_s12 = sphi %s1165_s12, %s1406_s12   ;;  %s1098_s11 = sphi %s1163_s11, %s1410_s11   ;;  %s1094_s10 = sphi %s1161_s10, %s1409_s10   ;;  %s1090_s30 = sphi %s1159_s30, %s1408_s30  }
   0xd   : > { %p762_p0 = scmp.ge.s32.totalorder %s1102_s12, 1  ;;  %p48_p1 = scmp.eq.s32.totalorder %s1181_s16, 0 }
   0xe   : > { %p262_p2 = scmp.lt.s32.totalorder %s1102_s12, 3  ;;  %s1104_s18 = smov [#allocation7]  }
   0xf   : > { %s275_s19 = sshll.u32 %s1104_s18, 4  ;;  %s1381_s21 = smov 128   ;;  %s276_s19 = int_to_ptr.vmem [resolvable:$true] %s275_s19 }
  0x10   : > { %p1186_p3 = pnand %p762_p0, %p262_p2  ;;  %s1383_s22 = smov 8  }
  0x11   : > { %s1204_s23 = sadd.s32 1, %s1102_s12   ;;  %s34_s25 = sadd.s32 1, %s1098_s11 }
  0x12   : > { %s273_s15 = sshll.u32 %s1392_s3, 4  ;;  %p809_p4 = pneg %p1186_p3  ;;  %s274_s15 = int_to_ptr.hbm [resolvable:$true] %s273_s15 }
  0x13   : > { %1395 = sst [smem:[#allocation17_spill]] %s1204_s23  ;;  %s31_s24 = ssub.s32 %s1102_s12, %s1204_s23 }
  0x14   : > { %p1194_p5 = pnand %p809_p4, %p48_p1  ;;  %p32_p6 = scmp.eq.s32.totalorder %s31_s24, 0 }
  0x15   : > { %p41_p7 = scmp.ne.s32.totalorder %s1098_s11, %s1094_s10  ;;  %p42_p8 = scmp.eq.s32.totalorder %s1102_s12, 0 }
  0x16   : > { %812 = dma.hbm_to_vmem [thread:$0]  (!%p1194_p5), %s274_s15, 256, %s276_s19, [#allocation8], %s1381_s21, %s1381_s21, %s1383_s22  }
  0x17   : > { %p47_p9 = scmp.ne.s32.totalorder %s1094_s10, %s1090_s30  ;;  %p43_p10 = por %p42_p8, %p41_p7 }
  0x18   : > { %s1214_s26 = scalar_select %p32_p6, %s1098_s11, %s34_s25  }
  0x19   : > { %p1218_p11 = por %p48_p1, %p47_p9  ;;  %p249_p12 = scmp.eq.s32.totalorder %s1181_s16, 1 }
  0x1a   : > { %1396 = sst [smem:[#allocation18_spill]] %s1214_s26  ;;  %p832_p13 = scmp.lt.s32.totalorder %s1102_s12, 2 }
  0x1b   : > { %s1385_s28 = sand.u32 1, %s1098_s11   ;;  %s1226_s29 = sshll.u32 %s1102_s12, 3 }
  0x1c   : > { %p1228_p0 = por %p249_p12, %p41_p7  ;;  %s1234_s30 = sshll.u32 %s1385_s28, 3 }
  0x1d   : > { %p1236_p2 = pnand %p832_p13, %p43_p10  ;;  %s345_s15 = sand.u32 1, %s1102_s12  }
  0x1e   : > { %s1400_s1 = sld [smem:[#allocation19_spill]]  ;;  %s349_s21 = scalar_lea.vmem [#allocation4], %s1234_s30 }
  0x1f   : > { %s357_s22 = sshll.u32 %s349_s21, 4  ;;  %s1246_s3 = scalar_lea.sflag [#allocation5], %s345_s15  ;;  %s358_s22 = int_to_ptr.vmem [resolvable:$true] %s357_s22 }
  0x20   : > { %p910_p6 = pneg %p1236_p2 }
  0x24   : > { %s353_s24 = scalar_lea.hbm %s1400_s1, %s1226_s29  ;;  %s913_s19 = scalar_lea.hbm %s1400_s1, 16 }
  0x25   : > { %s355_s25 = sshll.u32 %s353_s24, 4  ;;  %s356_s25 = int_to_ptr.hbm [resolvable:$true] %s355_s25 }
  0x26   : > { %s906_s28 = sshra.s32 %s356_s25, 4  ;;  %s907_s28 = int_to_ptr.hbm [resolvable:$true] %s906_s28 }
  0x27   : > { %s908_s26 = scalar_lea.hbm %s907_s28, 8  ;;  %p914_p9 = scmp.lt.s32.totalorder %s907_s28, %s1400_s1 }
  0x28   : > { %p909_p4 = scmp.ne.s32.totalorder %s907_s28, %s908_s26  ;;  %p915_p10 = scmp.lt.s32.totalorder %s913_s19, %s908_s26 }
  0x2a   : > { %p911_p7 = pnand %p910_p6, %p909_p4  ;;  %p916_p12 = por %p915_p10, %p914_p9 }
  0x2c   : > { %p912_p8 = pneg %p911_p7 }
  0x2e   : > { %p917_p13 = pnand %p916_p12, %p912_p8 }
  0x30   : > { %920 = shalt.err (!%p917_p13)
}
  0x31   : > { %825 = dma.hbm_to_vmem [thread:$0]  (!%p1236_p2), %s356_s25, 128, %s358_s22, %s1246_s3  }
  0x32   : > { %s1401_s4 = sld [smem:[#allocation21_spill]]  ;;  %s1107_s18 = smov [#allocation9]  }
  0x33   : > { %s289_s28 = sshll.u32 %s1107_s18, 4  ;;  %s1402_s5 = sld [smem:[#allocation22_spill]]  ;;  %s290_s28 = int_to_ptr.vmem [resolvable:$true] %s289_s28 }
  0x34   : > { %s1403_s21 = smov 8   ;;  %s1404_s1 = smov 128  }
  0x35   : > { %s1108_s22 = smov [#allocation10]   ;;  %s334_s18 = scalar_lea.hbm %s1371_s0, %s1226_s29 }
  0x36   : > { %s303_s25 = sshll.u32 %s1108_s22, 4  ;;  %s330_s26 = scalar_lea.vmem [#allocation2], %s1234_s30  ;;  %s304_s25 = int_to_ptr.vmem [resolvable:$true] %s303_s25 }
  0x37   : > { %s338_s19 = sshll.u32 %s330_s26, 4  ;;  %s339_s19 = int_to_ptr.vmem [resolvable:$true] %s338_s19 }
  0x38   : > { %s287_s12 = sshll.u32 %s1401_s4, 4  ;;  %s336_s4 = sshll.u32 %s334_s18, 4  ;;  %s288_s12 = int_to_ptr.hbm [resolvable:$true] %s287_s12  ;;  %s337_s4 = int_to_ptr.hbm [resolvable:$true] %s336_s4 }
  0x39   : > { %s301_s24 = sshll.u32 %s1402_s5, 4  ;;  %s996_s5 = sshra.s32 %s337_s4, 4  ;;  %s302_s24 = int_to_ptr.hbm [resolvable:$true] %s301_s24  ;;  %s997_s5 = int_to_ptr.hbm [resolvable:$true] %s996_s5 }
  0x3a   : > { %815 = dma.hbm_to_vmem [thread:$0]  (!%p1194_p5), %s288_s12, 256, %s290_s28, [#allocation8], %s1404_s1, %s1404_s1, %s1403_s21  }
  0x3b   : > { %818 = dma.hbm_to_vmem [thread:$0]  (!%p1194_p5), %s302_s24, 384, %s304_s25, [#allocation11], %s1404_s1, %s1404_s1, %s1403_s21  }
  0x3c   : > { %s1405_s12 = sand.u32 1, %s1098_s11   ;;  %s998_s22 = scalar_lea.hbm %s997_s5, 8 }
  0x3d   : > { %s327_s28 = scalar_lea.sflag [#allocation3], %s1405_s12  ;;  %p999_p4 = scmp.ne.s32.totalorder %s997_s5, %s998_s22 }
  0x3e   : > { %s1003_s24 = scalar_lea.hbm %s1371_s0, 16  ;;  %p1004_p5 = scmp.lt.s32.totalorder %s997_s5, %s1371_s0 }
  0x3f   : > { %p1001_p7 = pnand %p999_p4, %p910_p6  ;;  %p1005_p9 = scmp.lt.s32.totalorder %s1003_s24, %s998_s22 }
  0x41   : > { %p1002_p8 = pneg %p1001_p7  ;;  %p1006_p10 = por %p1005_p9, %p1004_p5 }
  0x43   : > { %p1007_p12 = pnand %p1006_p10, %p1002_p8 }
  0x45   : > { %1010 = shalt.err (!%p1007_p12)
}
  0x46   : > { %822 = dma.hbm_to_vmem [thread:$0]  (!%p1236_p2), %s337_s4, 128, %s339_s19, %s327_s28  }
  0x47   : > { %s372_s18 = scalar_lea.hbm %s1373_s2, %s1226_s29  ;;  %s368_s26 = scalar_lea.vmem [#allocation6], %s1234_s30 }
  0x48   : > { %s376_s12 = sshll.u32 %s368_s26, 4  ;;  %s374_s1 = sshll.u32 %s372_s18, 4  ;;  %s377_s12 = int_to_ptr.vmem [resolvable:$true] %s376_s12  ;;  %s375_s1 = int_to_ptr.hbm [resolvable:$true] %s374_s1 }
  0x49   : > { %s1026_s5 = sshra.s32 %s375_s1, 4  ;;  %s1033_s4 = scalar_lea.hbm %s1373_s2, 16  ;;  %s1027_s5 = int_to_ptr.hbm [resolvable:$true] %s1026_s5 }
  0x4a   : > { %s1028_s22 = scalar_lea.hbm %s1027_s5, 8  ;;  %p1034_p8 = scmp.lt.s32.totalorder %s1027_s5, %s1373_s2 }
  0x4b   : > { %p1029_p13 = scmp.ne.s32.totalorder %s1027_s5, %s1028_s22  ;;  %p1035_p5 = scmp.lt.s32.totalorder %s1033_s4, %s1028_s22 }
  0x4d   : > { %p1031_p4 = pnand %p1029_p13, %p910_p6  ;;  %p1036_p9 = por %p1035_p5, %p1034_p8 }
  0x4f   : > { %p1032_p7 = pneg %p1031_p4 }
  0x51   : > { %p1037_p10 = pnand %p1036_p9, %p1032_p7 }
  0x53   : > { %1040 = shalt.err (!%p1037_p10)
}
  0x54   : > { %828 = dma.hbm_to_vmem [thread:$0]  (!%p1236_p2), %s375_s1, 128, %s377_s12, %s1246_s3  }
  0x55   : > { %385 = sbr.rel (%p1186_p3) target bundleno = 247 (0xf7), region = 56  ;;  %s1316_s29 = sand.u32 (!%p1186_p3), 1, %s1094_s10  }
  0x56   : > { %s1319_s30 = sshll.u32 (!%p1186_p3), %s1316_s29, 3  ;;  %s388_s21 = scalar_lea.sflag (!%p1186_p3), [#allocation3], %s1316_s29 }
  0x57   : > { %s391_s25 = scalar_lea.vmem (!%p1186_p3), [#allocation2], %s1319_s30 }
  0x5a   : > { %1073 = dma.done.wait (%p1218_p11), %s388_s21, 128  }
  0x5b   : > { %1075 = vsyncadd (%p1218_p11), %s388_s21, 4294967168  ;;  %s397_s3 = sand.u32 1, %s1181_s16   ;;  %s401_s14 = scalar_lea.vmem [#allocation4], %s1319_s30 }
  0x5c   : > { %s398_s17 = scalar_lea.sflag [#allocation5], %s397_s3 }
  0x5d   : > { %1077 = dma.done.wait (%p1218_p11), %s398_s17, 256  }
  0x5e   : > { %1079 = vsyncadd (%p1218_p11), %s398_s17, 4294967040  ;;  %s411_s23 = scalar_lea.vmem [#allocation6], %s1319_s30 }
  0x5f   : > { %1081 = dma.done.wait (%p48_p1), [#allocation8], 512  }
  0x60   : > { %1083 = vsyncadd (%p48_p1), [#allocation8], 4294966784 }
  0x61   : > { %1085 = dma.done.wait (%p48_p1), [#allocation11], 384  }
  0x62   : > { %1087 = vsyncadd (%p48_p1), [#allocation11], 4294966912  ;;  %vm514_vm0 = vcmask 1043456   ;;  %v543_v0 = vld [vmem:[#allocation10 + $0x10] sm:$0xf]  ;;  %v542_v1 = vld [vmem:[#allocation10 + $0x8] sm:$0xff] }
  0x63   : > { %784 = vmatpush.msk.msra.mxu2 %vm514_vm0, %v543_v0  ;;  %v541_v2 = vld [vmem:[#allocation10] sm:$0xff]  ;;  %v473_v3 = vld [vmem:[#allocation7 + $0x8] sm:$0xff]  ;;  %v505_v4 = vld [vmem:[#allocation9 + $0x8] sm:$0xf]  ;;  %vm478_vm1 = vcmask 130048   ;;  %vm548_vm2 = vcmask 162816  }
  0x64   : > { %496 = vmatpush.msra.mxu0 %v473_v3  ;;  %781 = vmatpush.msk.msra.mxu1 %vm514_vm0, %v505_v4  ;;  %v472_v5 = vld [vmem:[#allocation7] sm:$0xff]  ;;  %v504_v6 = vld [vmem:[#allocation9] sm:$0xff]  ;;  %vm510_vm3 = vcmask 97280   ;;  %s790_s27 = smul.u32 24, %s1316_s29  ;;  %s787_s20 = sshll.u32 (%p1228_p0), %s1181_s16, 3 }
  0x65   : > { %v471_v7 = vld [vmem:[%s391_s25] sm:$0xff]  ;;  %569 = vmatpush.msra.mxu2 %v542_v1  ;;  %v503_v9 = vld [vmem:[%s401_s14] sm:$0xff]  ;;  %s585_s19 = scalar_lea.vmem (%p1228_p0), %s1380_s9, %s787_s20 }
  0x66   : > { %v540_v8 = vld [vmem:[%s411_s23] sm:$0xff]  ;;  %497 = vmatpush.msra.mxu0 %v472_v5  ;;  %533 = vmatpush.msra.mxu1 %v504_v6  ;;  %s470_s1 = scalar_lea.vmem [#allocation12], %s790_s27 }
  0x67   : > { %570 = vmatpush.msra.mxu2 %v541_v2  ;;  %780 = vmatmul.msk.f32.vlgmr.msra.gmra.mxu0 %vm478_vm1, %v471_v7  ;;  %v873_v10 = vld [vmem:[%s1377_s6] ss:$0 sm:$0xff] }
  0x68   : > { %785 = vmatmul.msk.f32.vlgmr.msra.gmra.mxu2 %vm548_vm2, %v540_v8  ;;  %782 = vmatmul.msk.f32.vlgmr.msra.gmra.mxu1 %vm510_vm3, %v503_v9  ;;  %v874_v11 = vld [vmem:[%s1378_s7] ss:$0 sm:$0xff] }
  0x69   : > { %v875_v16 = vld [vmem:[%s1379_s8] ss:$0 sm:$0xff] }
  0xe4   : > { %v499_v12 = vpop.f32.mrf.mxu0 }
  0xe5   : > { %v500_v13 = vadd.f32 %v873_v10, %v499_v12  ;;  %v535_v14 = vpop.f32.mrf.mxu1 }
  0xe6   : > { %v536_v15 = vadd.f32 %v874_v11, %v535_v14 }
  0xe7   : > { %502 = vst [vmem:[%s470_s1] sm:$0xff] %v500_v13 }
  0xe8   : > { %783 = vst [vmem:[%s470_s1 + $0x8] sm:$0xff] %v536_v15 }
  0xea   : > { %583 = sbr.rel (!%p1228_p0) target bundleno = 247 (0xf7), region = 84 }
  0xeb   : > { %v572_v17 = vpop.f32.mrf.mxu2 }
  0xec   : > { %v573_v18 = vadd.f32 %v875_v16, %v572_v17 }
  0xee   : > { %786 = vst [vmem:[%s470_s1 + $0x10] sm:$0xff] %v573_v18  ;;  %v618_v19 = vld [vmem:[%s470_s1] sm:$0xff] (%p1228_p0) }
  0xef   : > { %v620_v20 = vld [vmem:[%s470_s1 + $0x8] sm:$0xff]  ;;  %619 = vst [vmem:[%s585_s19] sm:$0xff] %v618_v19 }
  0xf0   : > { %621 = vst [vmem:[%s585_s19 + $0x10] sm:$0xff] %v620_v20 }
  0xf5   : > { %v622_v21 = vld [vmem:[%s470_s1 + $0x10] sm:$0xff] }
  0xf6   : > { %623 = vst [vmem:[%s585_s19 + $0x20] sm:$0xff] %v622_v21 }
  0xf7 PF: > { %s1406_s12 = sld [smem:[#allocation17_spill]]  ;;  %s1408_s30 = smov %s1094_s10 }
  0xf8   : > { %s1407_s28 = sld [smem:[#allocation18_spill]]  ;;  %s1409_s10 = smov %s1098_s11 }
  0xfd   : > { %p24_p1 = scmp.ge.s32.totalorder %s1406_s12, 4  }
  0xfe   : > { %s1410_s11 = smov %s1407_s28 }
  0xff   :  { %26 = sbr.rel (!%p24_p1) target bundleno = 12 (0xc), region = 172 }
 0x104   :  { %639 = vsyncpa [#allocation3], 1 }
 0x105   :  { %641 = vsyncpa [#allocation3 + $0x1], 1 }
 0x106   :  { %642 = vsyncpa [#allocation5], 1 }
 0x107   :  { %644 = vsyncpa [#allocation5 + $0x1], 1 }
 0x108   :  { %645 = vsyncpa [#allocation8], 1 }
 0x109   :  { %646 = vsyncpa [#allocation11], 1 }

</bundles_post_ra>
